<compile_context>
chip_gen: v7x
topology: tpu7x:2x2x1
jax: 0.10.0
libtpu: 0.0.40
codegen_flags: <defaults>
</compile_context>

<pallas_src>
import functools

import jax
import jax.numpy as jnp
from jax.experimental import pallas as pl
from jax.experimental.pallas import tpu as pltpu


def _round_up(x, m):
    return (x + m - 1) // m * m


def _pick_batch_tile(N, max_tile=8):
    """Largest divisor of N <= max_tile, preferring >= 2 grid steps (v7x TCs)."""
    best = 1
    for d in range(1, min(N, max_tile) + 1):
        if N % d == 0:
            best = d
    if N // best < 2:
        for d in range(best - 1, 0, -1):
            if N % d == 0 and N // d >= 2:
                return d
    return best


def _make_border_masks(H, W, Bt):
    """0/1 validity masks for the 8 non-center taps, tiled Bt times on lanes."""
    HW = H * W
    pos = jnp.arange(HW, dtype=jnp.int32)
    row = pos // W
    col = pos % W
    rows = []
    for dy in (-1, 0, 1):
        for dx in (-1, 0, 1):
            if dy == 0 and dx == 0:
                continue
            valid = ((row + dy >= 0) & (row + dy < H) &
                     (col + dx >= 0) & (col + dx < W))
            rows.append(valid)
    masks = jnp.stack(rows).astype(jnp.float32)      # (8, HW)
    return jnp.tile(masks, (1, Bt))                  # (8, Bt*HW)


def _pack_weight(w_hwio, cin_pad, cout_pad):
    """(3, 3, Cin, Cout) HWIO -> (Cout_p, 9*Cin_p), matching im2col tap order."""
    kh, kw, cin, cout = w_hwio.shape
    wp = jnp.pad(w_hwio, ((0, 0), (0, 0),
                          (0, cin_pad - cin), (0, cout_pad - cout)))
    return jnp.transpose(wp, (3, 0, 1, 2)).reshape(cout_pad, kh * kw * cin_pad)


def _pack_bias(b, cout_pad):
    return jnp.pad(b, (0, cout_pad - b.shape[0])).reshape(cout_pad, 1)


def _fused_conv_block_kernel(x_ref, m_ref, w1_ref, b1_ref, w2_ref, b2_ref,
                             o_ref, im2col_ref, *,
                             H, W, Bt, cin_p, cout_p, cout, mxu_dtype):
    """Bt batch images: x (Bt, Cin_p, HW) -> o (Bt, cout, HW).

    Both 3x3 'same' convs (+ bias + ReLU) run here; the intermediate
    activation and both im2col buffers never leave VMEM.
    """
    HW = H * W
    L = Bt * HW                         # matmul lane/N width (batch folded in)

    taps = [(dy, dx) for dy in (-1, 0, 1) for dx in (-1, 0, 1)]
    masks = m_ref[...]                  # (8, L) 0/1 floats, precomputed on host

    def conv3x3_relu(x2d, c_in, w_ref, b_ref):
        # Build the im2col operand (9*c_in, L) in the SHARED scratch buffer so
        # stage-1 and stage-2 im2col occupy the same VMEM region.
        mrow = 0
        for t, (dy, dx) in enumerate(taps):
            lo = t * c_in
            if dy == 0 and dx == 0:
                im2col_ref[lo:lo + c_in, :] = x2d.astype(mxu_dtype)
            else:
                # Roll on the flattened (batch*HW) lane axis; cross-image
                # wraparound only happens at positions the mask zeroes.
                shift = (-(dy * W + dx)) % L                 # static int
                rolled = pltpu.roll(x2d, shift, axis=1)      # XLU slot
                valid = masks[mrow:mrow + 1, :] != 0.0       # (1, L) bool
                patch = jnp.where(valid, rolled, 0.0)        # NaN/Inf safe
                im2col_ref[lo:lo + c_in, :] = patch.astype(mxu_dtype)
                mrow += 1
        # One MXU contraction per conv stage, lane-dense output (c_out_p, L).
        y = jnp.dot(w_ref[...], im2col_ref[0:9 * c_in, :],
                    preferred_element_type=jnp.float32)
        return jnp.maximum(y + b_ref[...], 0.0)              # bias + ReLU (f32)

    # Gather the Bt images into one (cin_p, Bt*HW) lane-dense slab.
    x2d = jnp.concatenate([x_ref[b] for b in range(Bt)], axis=1)

    h1 = conv3x3_relu(x2d, cin_p, w1_ref, b1_ref)            # stays on chip
    y = conv3x3_relu(h1, cout_p, w2_ref, b2_ref)             # (cout_p, L)

    # Scatter back per image; write only the REAL output channels so no
    # post-kernel slice / extra HBM pass is needed.
    for b in range(Bt):
        o_ref[b] = y[:cout, b * HW:(b + 1) * HW].astype(o_ref.dtype)


def conv_block(x_nchw, params, *, batch_tile=None, mxu_dtype=jnp.float32):
    """ConvBlock forward: conv3x3 -> ReLU -> conv3x3 -> ReLU (NCHW in/out)."""
    w1, b1, w2, b2 = params
    N, cin, H, W = x_nchw.shape
    cout = w1.shape[-1]
    HW = H * W

    # bf16 MXU operands need 16-aligned channels for clean sublane packing.
    ch_align = 8 if mxu_dtype == jnp.float32 else 16
    cin_p = _round_up(cin, ch_align)
    cout_p = _round_up(cout, ch_align)

    Bt = _pick_batch_tile(N) if batch_tile is None else batch_tile
    assert N % Bt == 0, (N, Bt)
    L = Bt * HW

    # NCHW with HW flattened onto the lane axis (free contiguous reshape).
    # Only channel padding here -- NO spatial padding in HBM.
    x = x_nchw.reshape(N, cin, HW)
    if cin_p != cin:
        x = jnp.pad(x, ((0, 0), (0, cin_p - cin), (0, 0)))

    w1m = _pack_weight(w1, cin_p, cout_p).astype(mxu_dtype)   # (cout_p, 9*cin_p)
    w2m = _pack_weight(w2, cout_p, cout_p).astype(mxu_dtype)  # (cout_p, 9*cout_p)
    b1c = _pack_bias(b1, cout_p)
    b2c = _pack_bias(b2, cout_p)
    masks = _make_border_masks(H, W, Bt)                      # (8, Bt*HW)

    kernel = functools.partial(
        _fused_conv_block_kernel, H=H, W=W, Bt=Bt,
        cin_p=cin_p, cout_p=cout_p, cout=cout, mxu_dtype=mxu_dtype)

    out = pl.pallas_call(
        kernel,
        out_shape=jax.ShapeDtypeStruct((N, cout, HW), x_nchw.dtype),
        grid_spec=pltpu.PrefetchScalarGridSpec(
            num_scalar_prefetch=0,
            grid=(N // Bt,),
            in_specs=[
                pl.BlockSpec((Bt, cin_p, HW), lambda i: (i, 0, 0)),
                pl.BlockSpec((8, L), lambda i: (0, 0)),            # masks
                pl.BlockSpec((cout_p, 9 * cin_p), lambda i: (0, 0)),
                pl.BlockSpec((cout_p, 1), lambda i: (0, 0)),
                pl.BlockSpec((cout_p, 9 * cout_p), lambda i: (0, 0)),
                pl.BlockSpec((cout_p, 1), lambda i: (0, 0)),
            ],
            out_specs=pl.BlockSpec((Bt, cout, HW), lambda i: (i, 0, 0)),
            scratch_shapes=[
                # im2col scratch shared by BOTH conv stages.
                pltpu.VMEM((9 * max(cin_p, cout_p), L), mxu_dtype),
            ],
        ),
        compiler_params=pltpu.CompilerParams(
            dimension_semantics=("parallel",),
            vmem_limit_bytes=32 * 1024 * 1024,
        ),
    )(x, masks, w1m, b1c, w2m, b2c)

    return out.reshape(N, cout, H, W)


def init_params(key, in_channels, out_channels):
    """Deterministic parameter init (uniform, like torch's default scale)."""
    k1, k2, k3, k4 = jax.random.split(key, 4)
    fan1 = in_channels * 9
    fan2 = out_channels * 9
    bnd1 = 1.0 / jnp.sqrt(fan1)
    bnd2 = 1.0 / jnp.sqrt(fan2)
    # weights stored as (kh, kw, Cin, Cout) (HWIO)
    w1 = jax.random.uniform(k1, (3, 3, in_channels, out_channels),
                            jnp.float32, -bnd1, bnd1)
    b1 = jax.random.uniform(k2, (out_channels,), jnp.float32, -bnd1, bnd1)
    w2 = jax.random.uniform(k3, (3, 3, out_channels, out_channels),
                            jnp.float32, -bnd2, bnd2)
    b2 = jax.random.uniform(k4, (out_channels,), jnp.float32, -bnd2, bnd2)
    return (w1, b1, w2, b2)


def _reference_conv_block(x_nchw, params):
    """Pure-JAX reference (lax.conv) for correctness checking."""
    w1, b1, w2, b2 = params

    def conv(x, w, b):
        y = jax.lax.conv_general_dilated(
            x, w, window_strides=(1, 1), padding="SAME",
            dimension_numbers=("NCHW", "HWIO", "NCHW"))
        return jnp.maximum(y + b[None, :, None, None], 0.0)

    return conv(conv(x_nchw, w1, b1), w2, b2)


if __name__ == "__main__":
    key = jax.random.PRNGKey(0)
    kx1, kx2, kp = jax.random.split(key, 3)

    in_channels, out_channels = 4, 8
    H, W = 16, 16
    params = init_params(kp, in_channels, out_channels)

    # Case 1: the spec's toy shape (N=2 -> Bt=1, grid=(2,)).
    x1 = jax.random.normal(kx1, (2, in_channels, H, W), dtype=jnp.float32)
    out1 = jax.block_until_ready(conv_block(x1, params))
    ref1 = jax.block_until_ready(_reference_conv_block(x1, params))
    assert out1.shape == (2, out_channels, H, W), out1.shape
    assert jnp.allclose(out1, ref1, atol=1e-4, rtol=1e-4), float(
        jnp.max(jnp.abs(out1 - ref1)))

    # Case 2: exercises the batched-lane path (N=4 -> Bt=2, grid=(2,)).
    x2 = jax.random.normal(kx2, (4, in_channels, H, W), dtype=jnp.float32)
    out2 = jax.block_until_ready(conv_block(x2, params))
    ref2 = jax.block_until_ready(_reference_conv_block(x2, params))
    assert out2.shape == (4, out_channels, H, W), out2.shape
    assert jnp.allclose(out2, ref2, atol=1e-4, rtol=1e-4), float(
        jnp.max(jnp.abs(out2 - ref2)))

    print("KERNEL_OK")
</pallas_src>

<mosaic_0001>
module attributes {stable_mosaic.version = 11 : i64} {
  func.func @_fused_conv_block_kernel(%arg0: i32, %arg1: memref<1x8x256xf32, #tpu.memory_space<vmem>>, %arg2: memref<8x256xf32, #tpu.memory_space<vmem>>, %arg3: memref<8x72xf32, #tpu.memory_space<vmem>>, %arg4: memref<8x1xf32, #tpu.memory_space<vmem>>, %arg5: memref<8x72xf32, #tpu.memory_space<vmem>>, %arg6: memref<8x1xf32, #tpu.memory_space<vmem>>, %arg7: memref<1x8x256xf32, #tpu.memory_space<vmem>>, %arg8: memref<72x256xf32, #tpu.memory_space<vmem>>) attributes {dimension_semantics = [#tpu.dimension_semantics<parallel>], iteration_bounds = array<i64: 2>, scalar_prefetch = 0 : i64, scratch_operands = 1 : i64, tpu.core_type = #tpu.core_type<tc>, window_params = [{transform_indices = @transform_0, window_bounds = array<i64: 1, 8, 256>}, {pipeline_mode = #tpu.pipeline_mode<synchronous>, transform_indices = @transform_1, window_bounds = array<i64: 8, 256>}, {pipeline_mode = #tpu.pipeline_mode<synchronous>, transform_indices = @transform_2, window_bounds = array<i64: 8, 72>}, {pipeline_mode = #tpu.pipeline_mode<synchronous>, transform_indices = @transform_3, window_bounds = array<i64: 8, 1>}, {pipeline_mode = #tpu.pipeline_mode<synchronous>, transform_indices = @transform_4, window_bounds = array<i64: 8, 72>}, {pipeline_mode = #tpu.pipeline_mode<synchronous>, transform_indices = @transform_5, window_bounds = array<i64: 8, 1>}, {transform_indices = @transform_6, window_bounds = array<i64: 1, 8, 256>}]} {
    %c0 = arith.constant 0 : index
    %c0_0 = arith.constant 0 : index
    %0 = vector.load %arg2[%c0, %c0_0] : memref<8x256xf32, #tpu.memory_space<vmem>>, vector<8x256xf32>
    %c0_1 = arith.constant 0 : index
    %c0_2 = arith.constant 0 : index
    %c0_3 = arith.constant 0 : index
    %1 = vector.load %arg1[%c0_1, %c0_2, %c0_3] : memref<1x8x256xf32, #tpu.memory_space<vmem>>, vector<1x8x256xf32>
    %2 = vector.shape_cast %1 : vector<1x8x256xf32> to vector<8x256xf32>
    %c17_i32 = arith.constant 17 : i32
    %3 = tpu.dynamic_rotate %2 by %c17_i32 dim 1 : vector<8x256xf32>, i32 -> vector<8x256xf32>
    %4 = vector.extract_strided_slice %0 {offsets = [0, 0], sizes = [1, 256], strides = [1, 1]} : vector<8x256xf32> to vector<1x256xf32>
    %cst = arith.constant 0.000000e+00 : f32
    %5 = vector.broadcast %cst : f32 to vector<1x256xf32>
    %6 = arith.cmpf one, %4, %5 : vector<1x256xf32>
    %cst_4 = arith.constant 0.000000e+00 : f32
    %7 = vector.shape_cast %6 : vector<1x256xi1> to vector<1x256xi1>
    %8 = vector.broadcast %7 : vector<1x256xi1> to vector<8x256xi1>
    %9 = vector.broadcast %cst_4 : f32 to vector<8x256xf32>
    %10 = arith.select %8, %3, %9 : vector<8x256xi1>, vector<8x256xf32>
    %c0_5 = arith.constant 0 : index
    %c0_6 = arith.constant 0 : index
    %11 = vector.load %arg8[%c0_5, %c0_6] : memref<72x256xf32, #tpu.memory_space<vmem>>, vector<8x256xf32>
    tpu.vector_store %arg8[%c0_5, %c0_6], %10 {strides = array<i32>} : memref<72x256xf32, #tpu.memory_space<vmem>>, vector<8x256xf32>,
    %c16_i32 = arith.constant 16 : i32
    %12 = tpu.dynamic_rotate %2 by %c16_i32 dim 1 : vector<8x256xf32>, i32 -> vector<8x256xf32>
    %13 = vector.extract_strided_slice %0 {offsets = [1, 0], sizes = [1, 256], strides = [1, 1]} : vector<8x256xf32> to vector<1x256xf32>
    %cst_7 = arith.constant 0.000000e+00 : f32
    %14 = vector.broadcast %cst_7 : f32 to vector<1x256xf32>
    %15 = arith.cmpf one, %13, %14 : vector<1x256xf32>
    %cst_8 = arith.constant 0.000000e+00 : f32
    %16 = vector.shape_cast %15 : vector<1x256xi1> to vector<1x256xi1>
    %17 = vector.broadcast %16 : vector<1x256xi1> to vector<8x256xi1>
    %18 = vector.broadcast %cst_8 : f32 to vector<8x256xf32>
    %19 = arith.select %17, %12, %18 : vector<8x256xi1>, vector<8x256xf32>
    %c8 = arith.constant 8 : index
    %c0_9 = arith.constant 0 : index
    %20 = vector.load %arg8[%c8, %c0_9] : memref<72x256xf32, #tpu.memory_space<vmem>>, vector<8x256xf32>
    tpu.vector_store %arg8[%c8, %c0_9], %19 {strides = array<i32>} : memref<72x256xf32, #tpu.memory_space<vmem>>, vector<8x256xf32>,
    %c15_i32 = arith.constant 15 : i32
    %21 = tpu.dynamic_rotate %2 by %c15_i32 dim 1 : vector<8x256xf32>, i32 -> vector<8x256xf32>
    %22 = vector.extract_strided_slice %0 {offsets = [2, 0], sizes = [1, 256], strides = [1, 1]} : vector<8x256xf32> to vector<1x256xf32>
    %cst_10 = arith.constant 0.000000e+00 : f32
    %23 = vector.broadcast %cst_10 : f32 to vector<1x256xf32>
    %24 = arith.cmpf one, %22, %23 : vector<1x256xf32>
    %cst_11 = arith.constant 0.000000e+00 : f32
    %25 = vector.shape_cast %24 : vector<1x256xi1> to vector<1x256xi1>
    %26 = vector.broadcast %25 : vector<1x256xi1> to vector<8x256xi1>
    %27 = vector.broadcast %cst_11 : f32 to vector<8x256xf32>
    %28 = arith.select %26, %21, %27 : vector<8x256xi1>, vector<8x256xf32>
    %c16 = arith.constant 16 : index
    %c0_12 = arith.constant 0 : index
    %29 = vector.load %arg8[%c16, %c0_12] : memref<72x256xf32, #tpu.memory_space<vmem>>, vector<8x256xf32>
    tpu.vector_store %arg8[%c16, %c0_12], %28 {strides = array<i32>} : memref<72x256xf32, #tpu.memory_space<vmem>>, vector<8x256xf32>,
    %c1_i32 = arith.constant 1 : i32
    %30 = tpu.dynamic_rotate %2 by %c1_i32 dim 1 : vector<8x256xf32>, i32 -> vector<8x256xf32>
    %31 = vector.extract_strided_slice %0 {offsets = [3, 0], sizes = [1, 256], strides = [1, 1]} : vector<8x256xf32> to vector<1x256xf32>
    %cst_13 = arith.constant 0.000000e+00 : f32
    %32 = vector.broadcast %cst_13 : f32 to vector<1x256xf32>
    %33 = arith.cmpf one, %31, %32 : vector<1x256xf32>
    %cst_14 = arith.constant 0.000000e+00 : f32
    %34 = vector.shape_cast %33 : vector<1x256xi1> to vector<1x256xi1>
    %35 = vector.broadcast %34 : vector<1x256xi1> to vector<8x256xi1>
    %36 = vector.broadcast %cst_14 : f32 to vector<8x256xf32>
    %37 = arith.select %35, %30, %36 : vector<8x256xi1>, vector<8x256xf32>
    %c24 = arith.constant 24 : index
    %c0_15 = arith.constant 0 : index
    %38 = vector.load %arg8[%c24, %c0_15] : memref<72x256xf32, #tpu.memory_space<vmem>>, vector<8x256xf32>
    tpu.vector_store %arg8[%c24, %c0_15], %37 {strides = array<i32>} : memref<72x256xf32, #tpu.memory_space<vmem>>, vector<8x256xf32>,
    %c32 = arith.constant 32 : index
    %c0_16 = arith.constant 0 : index
    %39 = vector.load %arg8[%c32, %c0_16] : memref<72x256xf32, #tpu.memory_space<vmem>>, vector<8x256xf32>
    tpu.vector_store %arg8[%c32, %c0_16], %2 {strides = array<i32>} : memref<72x256xf32, #tpu.memory_space<vmem>>, vector<8x256xf32>,
    %c255_i32 = arith.constant 255 : i32
    %40 = tpu.dynamic_rotate %2 by %c255_i32 dim 1 : vector<8x256xf32>, i32 -> vector<8x256xf32>
    %41 = vector.extract_strided_slice %0 {offsets = [4, 0], sizes = [1, 256], strides = [1, 1]} : vector<8x256xf32> to vector<1x256xf32>
    %cst_17 = arith.constant 0.000000e+00 : f32
    %42 = vector.broadcast %cst_17 : f32 to vector<1x256xf32>
    %43 = arith.cmpf one, %41, %42 : vector<1x256xf32>
    %cst_18 = arith.constant 0.000000e+00 : f32
    %44 = vector.shape_cast %43 : vector<1x256xi1> to vector<1x256xi1>
    %45 = vector.broadcast %44 : vector<1x256xi1> to vector<8x256xi1>
    %46 = vector.broadcast %cst_18 : f32 to vector<8x256xf32>
    %47 = arith.select %45, %40, %46 : vector<8x256xi1>, vector<8x256xf32>
    %c40 = arith.constant 40 : index
    %c0_19 = arith.constant 0 : index
    %48 = vector.load %arg8[%c40, %c0_19] : memref<72x256xf32, #tpu.memory_space<vmem>>, vector<8x256xf32>
    tpu.vector_store %arg8[%c40, %c0_19], %47 {strides = array<i32>} : memref<72x256xf32, #tpu.memory_space<vmem>>, vector<8x256xf32>,
    %c241_i32 = arith.constant 241 : i32
    %49 = tpu.dynamic_rotate %2 by %c241_i32 dim 1 : vector<8x256xf32>, i32 -> vector<8x256xf32>
    %50 = vector.extract_strided_slice %0 {offsets = [5, 0], sizes = [1, 256], strides = [1, 1]} : vector<8x256xf32> to vector<1x256xf32>
    %cst_20 = arith.constant 0.000000e+00 : f32
    %51 = vector.broadcast %cst_20 : f32 to vector<1x256xf32>
    %52 = arith.cmpf one, %50, %51 : vector<1x256xf32>
    %cst_21 = arith.constant 0.000000e+00 : f32
    %53 = vector.shape_cast %52 : vector<1x256xi1> to vector<1x256xi1>
    %54 = vector.broadcast %53 : vector<1x256xi1> to vector<8x256xi1>
    %55 = vector.broadcast %cst_21 : f32 to vector<8x256xf32>
    %56 = arith.select %54, %49, %55 : vector<8x256xi1>, vector<8x256xf32>
    %c48 = arith.constant 48 : index
    %c0_22 = arith.constant 0 : index
    %57 = vector.load %arg8[%c48, %c0_22] : memref<72x256xf32, #tpu.memory_space<vmem>>, vector<8x256xf32>
    tpu.vector_store %arg8[%c48, %c0_22], %56 {strides = array<i32>} : memref<72x256xf32, #tpu.memory_space<vmem>>, vector<8x256xf32>,
    %c240_i32 = arith.constant 240 : i32
    %58 = tpu.dynamic_rotate %2 by %c240_i32 dim 1 : vector<8x256xf32>, i32 -> vector<8x256xf32>
    %59 = vector.extract_strided_slice %0 {offsets = [6, 0], sizes = [1, 256], strides = [1, 1]} : vector<8x256xf32> to vector<1x256xf32>
    %cst_23 = arith.constant 0.000000e+00 : f32
    %60 = vector.broadcast %cst_23 : f32 to vector<1x256xf32>
    %61 = arith.cmpf one, %59, %60 : vector<1x256xf32>
    %cst_24 = arith.constant 0.000000e+00 : f32
    %62 = vector.shape_cast %61 : vector<1x256xi1> to vector<1x256xi1>
    %63 = vector.broadcast %62 : vector<1x256xi1> to vector<8x256xi1>
    %64 = vector.broadcast %cst_24 : f32 to vector<8x256xf32>
    %65 = arith.select %63, %58, %64 : vector<8x256xi1>, vector<8x256xf32>
    %c56 = arith.constant 56 : index
    %c0_25 = arith.constant 0 : index
    %66 = vector.load %arg8[%c56, %c0_25] : memref<72x256xf32, #tpu.memory_space<vmem>>, vector<8x256xf32>
    tpu.vector_store %arg8[%c56, %c0_25], %65 {strides = array<i32>} : memref<72x256xf32, #tpu.memory_space<vmem>>, vector<8x256xf32>,
    %c239_i32 = arith.constant 239 : i32
    %67 = tpu.dynamic_rotate %2 by %c239_i32 dim 1 : vector<8x256xf32>, i32 -> vector<8x256xf32>
    %68 = vector.extract_strided_slice %0 {offsets = [7, 0], sizes = [1, 256], strides = [1, 1]} : vector<8x256xf32> to vector<1x256xf32>
    %cst_26 = arith.constant 0.000000e+00 : f32
    %69 = vector.broadcast %cst_26 : f32 to vector<1x256xf32>
    %70 = arith.cmpf one, %68, %69 : vector<1x256xf32>
    %cst_27 = arith.constant 0.000000e+00 : f32
    %71 = vector.shape_cast %70 : vector<1x256xi1> to vector<1x256xi1>
    %72 = vector.broadcast %71 : vector<1x256xi1> to vector<8x256xi1>
    %73 = vector.broadcast %cst_27 : f32 to vector<8x256xf32>
    %74 = arith.select %72, %67, %73 : vector<8x256xi1>, vector<8x256xf32>
    %c64 = arith.constant 64 : index
    %c0_28 = arith.constant 0 : index
    %75 = vector.load %arg8[%c64, %c0_28] : memref<72x256xf32, #tpu.memory_space<vmem>>, vector<8x256xf32>
    tpu.vector_store %arg8[%c64, %c0_28], %74 {strides = array<i32>} : memref<72x256xf32, #tpu.memory_space<vmem>>, vector<8x256xf32>,
    %c0_29 = arith.constant 0 : index
    %c0_30 = arith.constant 0 : index
    %76 = vector.load %arg3[%c0_29, %c0_30] : memref<8x72xf32, #tpu.memory_space<vmem>>, vector<8x72xf32>
    %c0_31 = arith.constant 0 : index
    %c0_32 = arith.constant 0 : index
    %77 = vector.load %arg8[%c0_31, %c0_32] : memref<72x256xf32, #tpu.memory_space<vmem>>, vector<72x256xf32>
    %cst_33 = arith.constant dense<0.000000e+00> : vector<8x256xf32>
    %78 = tpu.matmul %76, %77, %cst_33 {dimension_numbers = #tpu.dot_dimension_numbers<[1], [0], [0], [1], [0, 0, 1, 1], [], []>} : vector<8x72xf32>, vector<72x256xf32>, vector<8x256xf32> -> vector<8x256xf32>
    %c0_34 = arith.constant 0 : index
    %c0_35 = arith.constant 0 : index
    %79 = vector.load %arg4[%c0_34, %c0_35] : memref<8x1xf32, #tpu.memory_space<vmem>>, vector<8x1xf32>
    %80 = vector.broadcast %79 : vector<8x1xf32> to vector<8x256xf32>
    %81 = arith.addf %78, %80 : vector<8x256xf32>
    %cst_36 = arith.constant 0.000000e+00 : f32
    %82 = vector.broadcast %cst_36 : f32 to vector<8x256xf32>
    %83 = arith.maximumf %81, %82 : vector<8x256xf32>
    %c17_i32_37 = arith.constant 17 : i32
    %84 = tpu.dynamic_rotate %83 by %c17_i32_37 dim 1 : vector<8x256xf32>, i32 -> vector<8x256xf32>
    %85 = vector.extract_strided_slice %0 {offsets = [0, 0], sizes = [1, 256], strides = [1, 1]} : vector<8x256xf32> to vector<1x256xf32>
    %cst_38 = arith.constant 0.000000e+00 : f32
    %86 = vector.broadcast %cst_38 : f32 to vector<1x256xf32>
    %87 = arith.cmpf one, %85, %86 : vector<1x256xf32>
    %cst_39 = arith.constant 0.000000e+00 : f32
    %88 = vector.shape_cast %87 : vector<1x256xi1> to vector<1x256xi1>
    %89 = vector.broadcast %88 : vector<1x256xi1> to vector<8x256xi1>
    %90 = vector.broadcast %cst_39 : f32 to vector<8x256xf32>
    %91 = arith.select %89, %84, %90 : vector<8x256xi1>, vector<8x256xf32>
    %c0_40 = arith.constant 0 : index
    %c0_41 = arith.constant 0 : index
    %92 = vector.load %arg8[%c0_40, %c0_41] : memref<72x256xf32, #tpu.memory_space<vmem>>, vector<8x256xf32>
    tpu.vector_store %arg8[%c0_40, %c0_41], %91 {strides = array<i32>} : memref<72x256xf32, #tpu.memory_space<vmem>>, vector<8x256xf32>,
    %c16_i32_42 = arith.constant 16 : i32
    %93 = tpu.dynamic_rotate %83 by %c16_i32_42 dim 1 : vector<8x256xf32>, i32 -> vector<8x256xf32>
    %94 = vector.extract_strided_slice %0 {offsets = [1, 0], sizes = [1, 256], strides = [1, 1]} : vector<8x256xf32> to vector<1x256xf32>
    %cst_43 = arith.constant 0.000000e+00 : f32
    %95 = vector.broadcast %cst_43 : f32 to vector<1x256xf32>
    %96 = arith.cmpf one, %94, %95 : vector<1x256xf32>
    %cst_44 = arith.constant 0.000000e+00 : f32
    %97 = vector.shape_cast %96 : vector<1x256xi1> to vector<1x256xi1>
    %98 = vector.broadcast %97 : vector<1x256xi1> to vector<8x256xi1>
    %99 = vector.broadcast %cst_44 : f32 to vector<8x256xf32>
    %100 = arith.select %98, %93, %99 : vector<8x256xi1>, vector<8x256xf32>
    %c8_45 = arith.constant 8 : index
    %c0_46 = arith.constant 0 : index
    %101 = vector.load %arg8[%c8_45, %c0_46] : memref<72x256xf32, #tpu.memory_space<vmem>>, vector<8x256xf32>
    tpu.vector_store %arg8[%c8_45, %c0_46], %100 {strides = array<i32>} : memref<72x256xf32, #tpu.memory_space<vmem>>, vector<8x256xf32>,
    %c15_i32_47 = arith.constant 15 : i32
    %102 = tpu.dynamic_rotate %83 by %c15_i32_47 dim 1 : vector<8x256xf32>, i32 -> vector<8x256xf32>
    %103 = vector.extract_strided_slice %0 {offsets = [2, 0], sizes = [1, 256], strides = [1, 1]} : vector<8x256xf32> to vector<1x256xf32>
    %cst_48 = arith.constant 0.000000e+00 : f32
    %104 = vector.broadcast %cst_48 : f32 to vector<1x256xf32>
    %105 = arith.cmpf one, %103, %104 : vector<1x256xf32>
    %cst_49 = arith.constant 0.000000e+00 : f32
    %106 = vector.shape_cast %105 : vector<1x256xi1> to vector<1x256xi1>
    %107 = vector.broadcast %106 : vector<1x256xi1> to vector<8x256xi1>
    %108 = vector.broadcast %cst_49 : f32 to vector<8x256xf32>
    %109 = arith.select %107, %102, %108 : vector<8x256xi1>, vector<8x256xf32>
    %c16_50 = arith.constant 16 : index
    %c0_51 = arith.constant 0 : index
    %110 = vector.load %arg8[%c16_50, %c0_51] : memref<72x256xf32, #tpu.memory_space<vmem>>, vector<8x256xf32>
    tpu.vector_store %arg8[%c16_50, %c0_51], %109 {strides = array<i32>} : memref<72x256xf32, #tpu.memory_space<vmem>>, vector<8x256xf32>,
    %c1_i32_52 = arith.constant 1 : i32
    %111 = tpu.dynamic_rotate %83 by %c1_i32_52 dim 1 : vector<8x256xf32>, i32 -> vector<8x256xf32>
    %112 = vector.extract_strided_slice %0 {offsets = [3, 0], sizes = [1, 256], strides = [1, 1]} : vector<8x256xf32> to vector<1x256xf32>
    %cst_53 = arith.constant 0.000000e+00 : f32
    %113 = vector.broadcast %cst_53 : f32 to vector<1x256xf32>
    %114 = arith.cmpf one, %112, %113 : vector<1x256xf32>
    %cst_54 = arith.constant 0.000000e+00 : f32
    %115 = vector.shape_cast %114 : vector<1x256xi1> to vector<1x256xi1>
    %116 = vector.broadcast %115 : vector<1x256xi1> to vector<8x256xi1>
    %117 = vector.broadcast %cst_54 : f32 to vector<8x256xf32>
    %118 = arith.select %116, %111, %117 : vector<8x256xi1>, vector<8x256xf32>
    %c24_55 = arith.constant 24 : index
    %c0_56 = arith.constant 0 : index
    %119 = vector.load %arg8[%c24_55, %c0_56] : memref<72x256xf32, #tpu.memory_space<vmem>>, vector<8x256xf32>
    tpu.vector_store %arg8[%c24_55, %c0_56], %118 {strides = array<i32>} : memref<72x256xf32, #tpu.memory_space<vmem>>, vector<8x256xf32>,
    %c32_57 = arith.constant 32 : index
    %c0_58 = arith.constant 0 : index
    %120 = vector.load %arg8[%c32_57, %c0_58] : memref<72x256xf32, #tpu.memory_space<vmem>>, vector<8x256xf32>
    tpu.vector_store %arg8[%c32_57, %c0_58], %83 {strides = array<i32>} : memref<72x256xf32, #tpu.memory_space<vmem>>, vector<8x256xf32>,
    %c255_i32_59 = arith.constant 255 : i32
    %121 = tpu.dynamic_rotate %83 by %c255_i32_59 dim 1 : vector<8x256xf32>, i32 -> vector<8x256xf32>
    %122 = vector.extract_strided_slice %0 {offsets = [4, 0], sizes = [1, 256], strides = [1, 1]} : vector<8x256xf32> to vector<1x256xf32>
    %cst_60 = arith.constant 0.000000e+00 : f32
    %123 = vector.broadcast %cst_60 : f32 to vector<1x256xf32>
    %124 = arith.cmpf one, %122, %123 : vector<1x256xf32>
    %cst_61 = arith.constant 0.000000e+00 : f32
    %125 = vector.shape_cast %124 : vector<1x256xi1> to vector<1x256xi1>
    %126 = vector.broadcast %125 : vector<1x256xi1> to vector<8x256xi1>
    %127 = vector.broadcast %cst_61 : f32 to vector<8x256xf32>
    %128 = arith.select %126, %121, %127 : vector<8x256xi1>, vector<8x256xf32>
    %c40_62 = arith.constant 40 : index
    %c0_63 = arith.constant 0 : index
    %129 = vector.load %arg8[%c40_62, %c0_63] : memref<72x256xf32, #tpu.memory_space<vmem>>, vector<8x256xf32>
    tpu.vector_store %arg8[%c40_62, %c0_63], %128 {strides = array<i32>} : memref<72x256xf32, #tpu.memory_space<vmem>>, vector<8x256xf32>,
    %c241_i32_64 = arith.constant 241 : i32
    %130 = tpu.dynamic_rotate %83 by %c241_i32_64 dim 1 : vector<8x256xf32>, i32 -> vector<8x256xf32>
    %131 = vector.extract_strided_slice %0 {offsets = [5, 0], sizes = [1, 256], strides = [1, 1]} : vector<8x256xf32> to vector<1x256xf32>
    %cst_65 = arith.constant 0.000000e+00 : f32
    %132 = vector.broadcast %cst_65 : f32 to vector<1x256xf32>
    %133 = arith.cmpf one, %131, %132 : vector<1x256xf32>
    %cst_66 = arith.constant 0.000000e+00 : f32
    %134 = vector.shape_cast %133 : vector<1x256xi1> to vector<1x256xi1>
    %135 = vector.broadcast %134 : vector<1x256xi1> to vector<8x256xi1>
    %136 = vector.broadcast %cst_66 : f32 to vector<8x256xf32>
    %137 = arith.select %135, %130, %136 : vector<8x256xi1>, vector<8x256xf32>
    %c48_67 = arith.constant 48 : index
    %c0_68 = arith.constant 0 : index
    %138 = vector.load %arg8[%c48_67, %c0_68] : memref<72x256xf32, #tpu.memory_space<vmem>>, vector<8x256xf32>
    tpu.vector_store %arg8[%c48_67, %c0_68], %137 {strides = array<i32>} : memref<72x256xf32, #tpu.memory_space<vmem>>, vector<8x256xf32>,
    %c240_i32_69 = arith.constant 240 : i32
    %139 = tpu.dynamic_rotate %83 by %c240_i32_69 dim 1 : vector<8x256xf32>, i32 -> vector<8x256xf32>
    %140 = vector.extract_strided_slice %0 {offsets = [6, 0], sizes = [1, 256], strides = [1, 1]} : vector<8x256xf32> to vector<1x256xf32>
    %cst_70 = arith.constant 0.000000e+00 : f32
    %141 = vector.broadcast %cst_70 : f32 to vector<1x256xf32>
    %142 = arith.cmpf one, %140, %141 : vector<1x256xf32>
    %cst_71 = arith.constant 0.000000e+00 : f32
    %143 = vector.shape_cast %142 : vector<1x256xi1> to vector<1x256xi1>
    %144 = vector.broadcast %143 : vector<1x256xi1> to vector<8x256xi1>
    %145 = vector.broadcast %cst_71 : f32 to vector<8x256xf32>
    %146 = arith.select %144, %139, %145 : vector<8x256xi1>, vector<8x256xf32>
    %c56_72 = arith.constant 56 : index
    %c0_73 = arith.constant 0 : index
    %147 = vector.load %arg8[%c56_72, %c0_73] : memref<72x256xf32, #tpu.memory_space<vmem>>, vector<8x256xf32>
    tpu.vector_store %arg8[%c56_72, %c0_73], %146 {strides = array<i32>} : memref<72x256xf32, #tpu.memory_space<vmem>>, vector<8x256xf32>,
    %c239_i32_74 = arith.constant 239 : i32
    %148 = tpu.dynamic_rotate %83 by %c239_i32_74 dim 1 : vector<8x256xf32>, i32 -> vector<8x256xf32>
    %149 = vector.extract_strided_slice %0 {offsets = [7, 0], sizes = [1, 256], strides = [1, 1]} : vector<8x256xf32> to vector<1x256xf32>
    %cst_75 = arith.constant 0.000000e+00 : f32
    %150 = vector.broadcast %cst_75 : f32 to vector<1x256xf32>
    %151 = arith.cmpf one, %149, %150 : vector<1x256xf32>
    %cst_76 = arith.constant 0.000000e+00 : f32
    %152 = vector.shape_cast %151 : vector<1x256xi1> to vector<1x256xi1>
    %153 = vector.broadcast %152 : vector<1x256xi1> to vector<8x256xi1>
    %154 = vector.broadcast %cst_76 : f32 to vector<8x256xf32>
    %155 = arith.select %153, %148, %154 : vector<8x256xi1>, vector<8x256xf32>
    %c64_77 = arith.constant 64 : index
    %c0_78 = arith.constant 0 : index
    %156 = vector.load %arg8[%c64_77, %c0_78] : memref<72x256xf32, #tpu.memory_space<vmem>>, vector<8x256xf32>
    tpu.vector_store %arg8[%c64_77, %c0_78], %155 {strides = array<i32>} : memref<72x256xf32, #tpu.memory_space<vmem>>, vector<8x256xf32>,
    %c0_79 = arith.constant 0 : index
    %c0_80 = arith.constant 0 : index
    %157 = vector.load %arg5[%c0_79, %c0_80] : memref<8x72xf32, #tpu.memory_space<vmem>>, vector<8x72xf32>
    %c0_81 = arith.constant 0 : index
    %c0_82 = arith.constant 0 : index
    %158 = vector.load %arg8[%c0_81, %c0_82] : memref<72x256xf32, #tpu.memory_space<vmem>>, vector<72x256xf32>
    %cst_83 = arith.constant dense<0.000000e+00> : vector<8x256xf32>
    %159 = tpu.matmul %157, %158, %cst_83 {dimension_numbers = #tpu.dot_dimension_numbers<[1], [0], [0], [1], [0, 0, 1, 1], [], []>} : vector<8x72xf32>, vector<72x256xf32>, vector<8x256xf32> -> vector<8x256xf32>
    %c0_84 = arith.constant 0 : index
    %c0_85 = arith.constant 0 : index
    %160 = vector.load %arg6[%c0_84, %c0_85] : memref<8x1xf32, #tpu.memory_space<vmem>>, vector<8x1xf32>
    %161 = vector.broadcast %160 : vector<8x1xf32> to vector<8x256xf32>
    %162 = arith.addf %159, %161 : vector<8x256xf32>
    %cst_86 = arith.constant 0.000000e+00 : f32
    %163 = vector.broadcast %cst_86 : f32 to vector<8x256xf32>
    %164 = arith.maximumf %162, %163 : vector<8x256xf32>
    %c0_87 = arith.constant 0 : index
    %c0_88 = arith.constant 0 : index
    %c0_89 = arith.constant 0 : index
    %165 = vector.load %arg7[%c0_87, %c0_88, %c0_89] : memref<1x8x256xf32, #tpu.memory_space<vmem>>, vector<1x8x256xf32>
    %166 = vector.shape_cast %165 : vector<1x8x256xf32> to vector<8x256xf32>
    %167 = vector.shape_cast %164 : vector<8x256xf32> to vector<1x8x256xf32>
    tpu.vector_store %arg7[%c0_87, %c0_88, %c0_89], %167 {strides = array<i32>} : memref<1x8x256xf32, #tpu.memory_space<vmem>>, vector<1x8x256xf32>,
    return
  }
  func.func @transform_0(%arg0: i32) -> (i32, i32, i32) {
    %c0_i32 = arith.constant 0 : i32
    %c0_i32_0 = arith.constant 0 : i32
    %c0_i32_1 = arith.constant 0 : i32
    return %arg0, %c0_i32, %c0_i32_0 : i32, i32, i32
  }
  func.func @transform_1(%arg0: i32) -> (i32, i32) {
    %c0_i32 = arith.constant 0 : i32
    %c0_i32_0 = arith.constant 0 : i32
    %c0_i32_1 = arith.constant 0 : i32
    return %c0_i32, %c0_i32_0 : i32, i32
  }
  func.func @transform_2(%arg0: i32) -> (i32, i32) {
    %c0_i32 = arith.constant 0 : i32
    %c0_i32_0 = arith.constant 0 : i32
    %c0_i32_1 = arith.constant 0 : i32
    return %c0_i32, %c0_i32_0 : i32, i32
  }
  func.func @transform_3(%arg0: i32) -> (i32, i32) {
    %c0_i32 = arith.constant 0 : i32
    %c0_i32_0 = arith.constant 0 : i32
    %c0_i32_1 = arith.constant 0 : i32
    return %c0_i32, %c0_i32_0 : i32, i32
  }
  func.func @transform_4(%arg0: i32) -> (i32, i32) {
    %c0_i32 = arith.constant 0 : i32
    %c0_i32_0 = arith.constant 0 : i32
    %c0_i32_1 = arith.constant 0 : i32
    return %c0_i32, %c0_i32_0 : i32, i32
  }
  func.func @transform_5(%arg0: i32) -> (i32, i32) {
    %c0_i32 = arith.constant 0 : i32
    %c0_i32_0 = arith.constant 0 : i32
    %c0_i32_1 = arith.constant 0 : i32
    return %c0_i32, %c0_i32_0 : i32, i32
  }
  func.func @transform_6(%arg0: i32) -> (i32, i32, i32) {
    %c0_i32 = arith.constant 0 : i32
    %c0_i32_0 = arith.constant 0 : i32
    %c0_i32_1 = arith.constant 0 : i32
    return %arg0, %c0_i32, %c0_i32_0 : i32, i32, i32
  }
}

</mosaic_0001>

<bundles_post_ra>
// kernel: tpu_custom_call.1
= control target key start
LH: loop header
LB: loop body
LE: loop exit
PB: predicated region body
PF: predicated region fallthrough
CT: control target
= control target key end

     0   :  { %11 = vsyncpa [#allocation4], 0  ;;  %s1602_s0 = inlined_call_operand.hbm [shape: f32[2,8,256], index: 0, kind: input, shape index: {}]   ;;  %s1603_s1 = inlined_call_operand.vmem [shape: f32[8,256], index: 1, kind: input, shape index: {}]   ;;  %s1604_s2 = inlined_call_operand.vmem [shape: f32[8,72], index: 2, kind: input, shape index: {}]   ;;  %s1605_s3 = inlined_call_operand.vmem [shape: f32[8,1], index: 3, kind: input, shape index: {}]   ;;  %s1606_s4 = inlined_call_operand.vmem [shape: f32[8,72], index: 4, kind: input, shape index: {}]   ;;  %s1607_s5 = inlined_call_operand.vmem [shape: f32[8,1], index: 5, kind: input, shape index: {}]   ;;  %s1608_s6 = inlined_call_operand.hbm [shape: f32[2,8,256], index: 6, kind: output, shape index: {}]  }
   0x1   :  { %13 = vsyncpa [#allocation4 + $0x1], 0 }
   0x2   :  { %14 = vsyncpa [#allocation5], 0 }
   0x3   :  { %16 = vsyncpa [#allocation5 + $0x1], 0  ;;  %s1193_s21 = smov 0   ;;  %s1195_s22 = smov 0  }
   0x4   :  { %s1197_s23 = smov 0   ;;  %s1199_s24 = smov 0  }
   0x5 LB: > { %s1214_s25 = sadd.s32 4294967295, %s1143_s24   ;;  %s820_s26 = sadd.s32 4294967294, %s1143_s24   ;;  %s1143_s24 = sphi %s1199_s24, %s1658_s24   ;;  %s1139_s23 = sphi %s1197_s23, %s1657_s23   ;;  %s1135_s22 = sphi %s1195_s22, %s1656_s22   ;;  %s1131_s21 = sphi %s1193_s21, %s1655_s21  }
   0x6   : > { %s1218_s27 = sadd.s32 1, %s1143_s24   ;;  %s29_s28 = sadd.s32 1, %s1139_s23 }
   0x7   : > { %s26_s29 = ssub.s32 %s1143_s24, %s1218_s27  ;;  %p36_p0 = scmp.ne.s32.totalorder %s1139_s23, %s1135_s22 }
   0x8   : > { %p27_p1 = scmp.eq.s32.totalorder %s26_s29, 0  ;;  %p37_p2 = scmp.eq.s32.totalorder %s1143_s24, 0 }
   0x9   : > { %p42_p3 = scmp.ne.s32.totalorder %s1135_s22, %s1131_s21  ;;  %p43_p4 = scmp.eq.s32.totalorder %s1214_s25, 0 }
   0xa   : > { %s1230_s30 = scalar_select %p27_p1, %s1139_s23, %s29_s28  }
   0xb   : > { %p1232_p5 = por %p37_p2, %p36_p0  ;;  %p1236_p6 = por %p43_p4, %p42_p3 }
   0xc   : > { %p171_p7 = scmp.eq.s32.totalorder %s1214_s25, 1  ;;  %p177_p8 = scmp.eq.s32.totalorder %s820_s26, 1 }
   0xd   : > { %p930_p10 = scmp.lt.s32.totalorder %s1143_s24, 2  ;;  %s212_s11 = sand.u32 1, %s1139_s23  }
   0xe   : > { %p1243_p11 = por %p171_p7, %p36_p0  ;;  %p1247_p12 = por %p177_p8, %p42_p3 }
   0xf   : > { %s836_s12 = sshll.u32 %s1143_s24, 8  ;;  %s823_s13 = sshll.u32 %s212_s11, 4 }
  0x10   : > { %s1619_s9 = scalar_select %p1243_p11, 1, 0 }
  0x11   : > { %s1620_s10 = scalar_select %p1247_p12, 1, 0 }
  0x12   : > { %s1256_s16 = scalar_lea.hbm %s1602_s0, %s836_s12  ;;  %s216_s17 = scalar_lea.vmem [#allocation3], %s823_s13 }
  0x13   : > { %s224_s18 = sshll.u32 %s216_s17, 4  ;;  %p1260_p13 = pnand %p930_p10, %p1232_p5  ;;  %s1264_s18 = int_to_ptr.vmem [resolvable:$true] %s224_s18 }
  0x14   : > { %s213_s20 = scalar_lea.sflag [#allocation4], %s212_s11  ;;  %s1047_s26 = scalar_lea.hbm %s1256_s16, 256 }
  0x15   : > { %p1048_p2 = scmp.ne.s32.totalorder %s1256_s16, %s1047_s26  ;;  %p1049_p3 = pneg %p1260_p13 }
  0x16   : > { %s1052_s7 = scalar_lea.hbm %s1602_s0, 512  ;;  %p1053_p5 = scmp.lt.u32.totalorder %s1256_s16, %s1602_s0 }
  0x17   : > { %p1050_p4 = pnand %p1049_p3, %p1048_p2  ;;  %p1054_p8 = scmp.lt.u32.totalorder %s1052_s7, %s1047_s26 }
  0x18   : > { %p1056_p9 = scmp.lt.u32.totalorder %s1047_s26, %s1256_s16 }
  0x19   : > { %p1051_p7 = pneg %p1050_p4  ;;  %p1055_p10 = por %p1054_p8, %p1053_p5 }
  0x1b   : > { %p1057_p0 = por %p1056_p9, %p1055_p10 }
  0x1d   : > { %p1058_p1 = pnand %p1057_p0, %p1051_p7 }
  0x1f   : > { %1061 = shalt.err (!%p1058_p1)
}
  0x20   : > { %s1062_s11 = scalar_lea.vmem %s1264_s18, 256  ;;  %s1145_s14 = smov [#allocation3]  }
  0x21   : > { %p1063_p2 = scmp.ne.s32.totalorder %s1264_s18, %s1062_s11  ;;  %s1067_s15 = sshll.u32 %s1145_s14, 4  ;;  %s1068_s15 = int_to_ptr.vmem [resolvable:$false] %s1067_s15 }
  0x22   : > { %s1069_s17 = scalar_lea.vmem %s1068_s15, 512  ;;  %p1070_p11 = scmp.lt.s32.totalorder %s1264_s18, %s1068_s15 }
  0x23   : > { %p1065_p4 = pnand %p1063_p2, %p1049_p3  ;;  %p1071_p5 = scmp.lt.s32.totalorder %s1069_s17, %s1062_s11 }
  0x25   : > { %p1066_p12 = pneg %p1065_p4  ;;  %p1072_p8 = por %p1071_p5, %p1070_p11 }
  0x27   : > { %p1073_p9 = pnand %p1072_p8, %p1066_p12 }
  0x29   : > { %1076 = shalt.err (!%p1073_p9)
}
  0x2a   : > { %925 = dma.hbm_to_vmem [thread:$0]  (!%p1260_p13), %s1256_s16, 256, %s1264_s18, %s213_s20  }
  0x2b   : > { %p1622_p0 = scmp.lt.s32.totalorder %s1143_s24, 3  ;;  %p1623_p1 = scmp.ge.s32.totalorder %s1143_s24, 1 }
  0x2d   : > { %p230_p3 = pnand %p1623_p1, %p1622_p0 }
  0x2e   : > { %s1298_s26 = sand.u32 (!%p230_p3), 1, %s1135_s22  }
  0x2f   : > { %233 = sbr.rel (%p230_p3) target bundleno = 788 (0x314), region = 44  ;;  %s1610_s28 = sshll.u32 (!%p230_p3), %s1298_s26, 4 }
  0x30   : > { %s236_s29 = scalar_lea.sflag (!%p230_p3), [#allocation4], %s1298_s26  ;;  %s239_s19 = scalar_lea.vmem (!%p230_p3), [#allocation3], %s1610_s28 }
  0x36   : > { %1122 = dma.done.wait (%p1236_p6), %s236_s29, 256  }
  0x37   : > { %1124 = vsyncadd (%p1236_p6), %s236_s29, 4294967040  ;;  %v1146_v0 = vmov 0   ;;  %v1308_v1 = vld [vmem:[%s239_s19] sm:$0xff]  ;;  %v1310_v2 = vld [vmem:[%s239_s19 + $0x8] sm:$0xff]  ;;  %s1147_s16 = smov 15   ;;  %s1148_s18 = smov 17   ;;  %v276_v6 = vlaneseq }
  0x38   : > { %1010 = vset.pattern.permute.xlu1 %v1146_v0  ;;  %1046 = vset.pattern.permute.xlu0 %v1146_v0  ;;  %v985_v3 = vpack.i.bf16 %v1310_v2, %v1308_v1  ;;  %s1149_s20 = smov 1   ;;  %s1150_s8 = smov 16   ;;  %v1155_v4 = vmov 0.0   ;;  %v467_v5 = vld [vmem:[%s1605_s3] sm:$0xff]  ;;  %v269_v7 = vld [vmem:[%s1603_s1 + $0x8] sm:$0xff] }
  0x39   : > { %s1151_s7 = smov 127   ;;  %s1152_s12 = smov 113   ;;  %541 = vmatprep.mubr.f32.mxu0 %v1155_v4  ;;  %724 = vmatprep.mubr.f32.mxu1 %v1155_v4  ;;  %v268_v8 = vld [vmem:[%s1603_s1] sm:$0xff]  ;;  %v1334_v9 = vshrl.u32 %v276_v6, 7  ;;  %vm282_vm0 = vcmp.ne.f32.partialorder %v269_v7, 0.0  ;;  %v1344_v16 = vand.u32 127, %v276_v6 }
  0x3a   : > { %986 = vrot.lane.b32.xlu1 %v985_v3, %s1147_s16  ;;  %976 = vrot.lane.b32.xlu0 %v985_v3, %s1148_s18  ;;  %s1153_s13 = smov 112   ;;  %s1154_s11 = smov 111   ;;  %vm281_vm1 = vcmp.ne.f32.partialorder %v268_v8, 0.0  ;;  %v1339_v13 = vsel %vm282_vm0, 1, %v1146_v0 }
  0x3b   : > { %v287_v10 = vsub.s32 0, %v1334_v9  ;;  %v308_v11 = vsub.s32 1, %v1334_v9  ;;  %v329_v12 = vsub.s32 2, %v1334_v9  ;;  %v1341_v14 = vsel %vm281_vm1, 1, %v1146_v0  ;;  %s736_s19 = scalar_lea.sflag [#allocation5], %s1298_s26  ;;  %p1652_p11 = scmp.ne.s32.totalorder %s1619_s9, 0 }
  0x3c   : > { %v350_v15 = vsub.s32 3, %v1334_v9  ;;  %vm1612_vm2 = vcmp.lt.s32.totalorder %v1344_v16, 15  ;;  %vm1613_vm3 = vcmp.lt.s32.totalorder %v1344_v16, 1  ;;  %vm278_vm4 = vcmp.lt.s32.totalorder %v1344_v16, 17  ;;  %s1157_s28 = smov [#allocation6]  }
  0x3d   : > { %v292_v17 = vrot.slane %v1339_v13, %v287_v10  ;;  %v313_v18 = vrot.slane %v1339_v13, %v308_v11  ;;  %v288_v19 = vrot.slane %v1341_v14, %v287_v10  ;;  %v334_v20 = vrot.slane %v1339_v13, %v329_v12  ;;  %s1081_s14 = sshll.u32 %s1157_s28, 4  ;;  %s1082_s14 = int_to_ptr.vmem [resolvable:$false] %s1081_s14 }
  0x3e   : > { %991 = vrot.lane.b32.xlu1 %v985_v3, %s1149_s20  ;;  %981 = vrot.lane.b32.xlu0 %v985_v3, %s1150_s8  ;;  %v309_v21 = vrot.slane %v1341_v14, %v308_v11  ;;  %v355_v22 = vrot.slane %v1339_v13, %v350_v15  ;;  %v1355_v23 = vrot.slane %v1341_v14, %v329_v12  ;;  %vm1614_vm5 = vcmp.lt.s32.totalorder %v1344_v16, 16  ;;  %s1083_s15 = scalar_lea.vmem %s1082_s14, 512 }
  0x3f   : > { %v351_v24 = vrot.slane %v1341_v14, %v350_v15  ;;  %vm1611_vm6 = vcmp.lt.s32.totalorder %v1344_v16, 127  ;;  %v373_v27 = vsub.s32 4, %v1334_v9  ;;  %vm294_vm7 = vcmp.eq.s32.totalorder %v292_v17, 1 }
  0x40   : > { %vm315_vm8 = vcmp.eq.s32.totalorder %v313_v18, 1  ;;  %vm293_vm9 = vcmp.eq.s32.totalorder %v288_v19, 1  ;;  %vm336_vm10 = vcmp.eq.s32.totalorder %v334_v20, 1  ;;  %vm314_vm11 = vcmp.eq.s32.totalorder %v309_v21, 1 }
  0x41   : > { %vm357_vm12 = vcmp.eq.s32.totalorder %v355_v22, 1  ;;  %vm335_vm13 = vcmp.eq.s32.totalorder %v1355_v23, 1  ;;  %vm356_vm14 = vcmp.eq.s32.totalorder %v351_v24, 1  ;;  %vm389_vm15 = vcmp.lt.s32.totalorder %v1344_v16, 113  ;;  %vm1378_vm0 = vmpackc.low %vm315_vm8, %vm294_vm7  ;;  %v632_v22 = vld [vmem:[%s1606_s4] sm:$0xff] }
  0x42   : > { %996 = vrot.lane.b32.xlu0 %v985_v3, %s1151_s7  ;;  %1001 = vrot.lane.b32.xlu1 %v985_v3, %s1152_s12  ;;  %v378_v34 = vrot.slane %v1339_v13, %v373_v27  ;;  %v394_v35 = vsub.s32 5, %v1334_v9  ;;  %v374_v42 = vrot.slane %v1341_v14, %v373_v27  ;;  %v415_v43 = vsub.s32 6, %v1334_v9  ;;  %vm1388_vm1 = vmpackc.low %vm314_vm11, %vm293_vm9 }
  0x43   : > { %vm1395_vm8 = vmpackc.low %vm357_vm12, %vm336_vm10  ;;  %vm1615_vm9 = vcmp.lt.s32.totalorder %v1344_v16, 112  ;;  %vm1156_vm12 = vmmov 1  }
  0x44   : > { %vm380_vm7 = vcmp.eq.s32.totalorder %v378_v34, 1  ;;  %v399_v54 = vrot.slane %v1339_v13, %v394_v35  ;;  %v420_v63 = vrot.slane %v1339_v13, %v415_v43  ;;  %vm379_vm10 = vcmp.eq.s32.totalorder %v374_v42, 1  ;;  %vm1420_vm11 = vmpackc.low %vm356_vm14, %vm335_vm13 }
  0x45   : > { %v395_v8 = vrot.slane %v1341_v14, %v394_v35 }
  0x46   : > { %1006 = vrot.lane.b32.xlu0 %v985_v3, %s1153_s13  ;;  %427 = vrot.lane.b32.xlu1 %v1308_v1, %s1154_s11  ;;  %v436_v3 = vsub.s32 7, %v1334_v9  ;;  %v416_v9 = vrot.slane %v1341_v14, %v415_v43  ;;  %vm401_vm13 = vcmp.eq.s32.totalorder %v399_v54, 1  ;;  %vm422_vm14 = vcmp.eq.s32.totalorder %v420_v63, 1 }
  0x48   : > { %v1454_v23 = vrot.slane %v1339_v13, %v436_v3 }
  0x4a   : > { %429 = vrot.lane.b32.xlu0 %v1310_v2, %s1154_s11  ;;  %470 = vperm.xlu1 %1010, %v467_v5  }
  0xac   : > { %v987_v25 = vpop.permute.xlu1 %986  ;;  %v977_v26 = vpop.permute.xlu0 %976 }
  0xad   : > { %v989_v28 = vunpack.i.h.bf16 %v987_v25  ;;  %v988_v29 = vunpack.i.l.bf16 %v987_v25  ;;  %v979_v30 = vunpack.i.h.bf16 %v977_v26  ;;  %v978_v31 = vunpack.i.l.bf16 %v977_v26 }
  0xaf   : > { %v325_v40 = vsel %vm1612_vm2, %v988_v29, %v989_v28  ;;  %v279_v41 = vsel %vm278_vm4, %v978_v31, %v979_v30  ;;  %v280_v47 = vsel %vm278_vm4, %v979_v30, %v978_v31  ;;  %v326_v60 = vsel %vm1612_vm2, %v989_v28, %v988_v29  ;;  %vm1449_vm2 = vmpackc.low %vm422_vm14, %vm401_vm13 }
  0xb0   : > { %v992_v32 = vpop.permute.xlu1 %991  ;;  %v982_v33 = vpop.permute.xlu0 %981  ;;  %v1466_v28 = vrot.slane %v1341_v14, %v436_v3  ;;  %v448_v14 = vld [vmem:[%s1604_s2] sm:$0xff]  ;;  %vm1640_vm13 = vcmp.lt.s32.totalorder %v1344_v16, 16 }
  0xb1   : > { %v994_v36 = vunpack.i.h.bf16 %v992_v32  ;;  %v993_v37 = vunpack.i.l.bf16 %v992_v32  ;;  %v984_v38 = vunpack.i.h.bf16 %v982_v33  ;;  %v983_v39 = vunpack.i.l.bf16 %v982_v33  ;;  %vm1641_vm14 = vmmov %vm1640_vm13 }
  0xb3   : > { %v346_v44 = vsel %vm1613_vm3, %v993_v37, %v994_v36  ;;  %v304_v45 = vsel %vm1614_vm5, %v983_v39, %v984_v38  ;;  %v305_v48 = vsel %vm1614_vm5, %v984_v38, %v983_v39  ;;  %v347_v61 = vsel %vm1613_vm3, %v994_v36, %v993_v37  ;;  %v651_v38 = vld [vmem:[%s1607_s5] sm:$0xff] }
  0xb4   : > { %v870_v49 = vpack.c.bf16 %v304_v45, %v279_v41  ;;  %v873_v50 = vpack.c.bf16 %v305_v48, %v280_v47  ;;  %v997_v52 = vpop.permute.xlu0 %996  ;;  %v1002_v53 = vpop.permute.xlu1 %1001  ;;  %v876_v62 = vpack.c.bf16 %v346_v44, %v325_v40  ;;  %v879_v10 = vpack.c.bf16 %v347_v61, %v326_v60 }
  0xb5   : > { %v999_v55 = vunpack.i.h.bf16 %v997_v52  ;;  %v998_v56 = vunpack.i.l.bf16 %v997_v52  ;;  %v1004_v58 = vunpack.i.h.bf16 %v1002_v53  ;;  %v1003_v59 = vunpack.i.l.bf16 %v1002_v53 }
  0xb6   : > { %872 = vmatprep.subr.msk.bf16.mxu0 %vm1378_vm0, %v870_v49  ;;  %vm400_vm3 = vcmp.eq.s32.totalorder %v395_v8, 1  ;;  %vm421_vm5 = vcmp.eq.s32.totalorder %v416_v9, 1 }
  0xb7   : > { %875 = vmatpush1.bf16.msk.msra.mxu0 %vm1388_vm1, %v873_v50  ;;  %v370_v0 = vsel %vm1611_vm6, %v999_v55, %v998_v56  ;;  %v369_v4 = vsel %vm1611_vm6, %v998_v56, %v999_v55  ;;  %v391_v11 = vsel %vm389_vm15, %v1004_v58, %v1003_v59  ;;  %vm1429_vm6 = vmpackc.low %vm380_vm7, %vm1156_vm12  ;;  %v390_v19 = vsel %vm389_vm15, %v1003_v59, %v1004_v58 }
  0xb8   : > { %v882_v5 = vpack.c.bf16 %v370_v0, %v1310_v2  ;;  %878 = vmatprep.subr.msk.bf16.mxu0 %vm1395_vm8, %v876_v62  ;;  %v1007_v7 = vpop.permute.xlu0 %1006  ;;  %v885_v17 = vpack.c.bf16 %v369_v4, %v1308_v1  ;;  %vm1445_vm7 = vmpackc.low %vm379_vm10, %vm1156_vm12  ;;  %v428_v24 = vpop.permute.xlu1 %427  ;;  %vm443_vm12 = vcmp.eq.s32.totalorder %v1454_v23, 1 }
  0xb9   : > { %v1009_v2 = vunpack.i.h.bf16 %v1007_v7  ;;  %v1008_v12 = vunpack.i.l.bf16 %v1007_v7  ;;  %vm1461_vm10 = vmpackc.low %vm421_vm5, %vm400_vm3  ;;  %vm442_vm3 = vcmp.eq.s32.totalorder %v1466_v28, 1  ;;  %vm1616_vm5 = vcmask 588800  }
  0xbb   : > { %881 = vmatpush1.bf16.msk.msra.mxu0 %vm1420_vm11, %v879_v10  ;;  %v412_v18 = vsel %vm1615_vm9, %v1009_v2, %v1008_v12  ;;  %v411_v20 = vsel %vm1615_vm9, %v1008_v12, %v1009_v2  ;;  %vm431_vm9 = vcmp.lt.s32.totalorder %v1344_v16, 111 }
  0xbc   : > { %v888_v21 = vpack.c.bf16 %v412_v18, %v391_v11  ;;  %884 = vmatprep.subr.msk.bf16.mxu0 %vm1429_vm6, %v882_v5  ;;  %v430_v25 = vpop.permute.xlu0 %429  ;;  %v891_v26 = vpack.c.bf16 %v411_v20, %v390_v19 }
  0xbd   : > { %v433_v13 = vsel %vm431_vm9, %v430_v25, %v428_v24  ;;  %v432_v29 = vsel %vm431_vm9, %v428_v24, %v430_v25 }
  0xbf   : > { %887 = vmatpush1.bf16.msk.msra.mxu0 %vm1445_vm7, %v885_v17 }
  0xc0   : > { %890 = vmatprep.subr.msk.bf16.mxu0 %vm1449_vm2, %v888_v21 }
  0xc3   : > { %893 = vmatpush1.bf16.msk.msra.mxu0 %vm1461_vm10, %v891_v26 }
  0xc4   : > { %852 = vmatprep.subr.msk.mxu0 %vm443_vm12, %v433_v13 }
  0xc7   : > { %853 = vmatpush1.msk.msra.mxu0 %vm442_vm3, %v432_v29 }
  0xc8   : > { %829 = vmatmul.mubr.msk.f32.vlgmr.msra.gmra.mrb[0].mxu0 %vm1616_vm5, %v448_v14  ;;  %vm1642_vm5 = vcmp.lt.s32.totalorder %v1344_v16, 1 }
  0xc9   : > { %v471_v30 = vpop.permute.xlu1 %470 }
 0x19b   : > { %v543_v31 = vpop.f32.mrb[0].mxu0 }
 0x19c   : > { %v544_v32 = vadd.f32 %v543_v31, %v471_v30  ;;  %v545_v33 = vpop.f32.mrb[1].mxu0 }
 0x19d   : > { %v546_v34 = vadd.f32 %v545_v33, %v471_v30 }
 0x19e   : > { %v548_v35 = vmax.f32 %v544_v32, 0.0 }
 0x19f   : > { %v549_v36 = vmax.f32 %v546_v34, 0.0 }
 0x1a1   : > { %v1016_v37 = vpack.i.bf16 %v549_v36, %v548_v35 }
 0x1a3   : > { %1017 = vrot.lane.b32.xlu1 %v1016_v37, %s1150_s8  ;;  %1012 = vrot.lane.b32.xlu0 %v1016_v37, %s1148_s18  ;;  %s1651_s8 = sshll.u32 %s1298_s26, 4 }
 0x1a7   : > { %1027 = vrot.lane.b32.xlu1 %v1016_v37, %s1149_s20  ;;  %1022 = vrot.lane.b32.xlu0 %v1016_v37, %s1147_s16  ;;  %s837_s20 = sshll.u32 %s1214_s25, 8 }
 0x1a8   : > { %s1558_s29 = scalar_lea.hbm %s1608_s6, %s837_s20 }
 0x1ab   : > { %1037 = vrot.lane.b32.xlu1 %v1016_v37, %s1152_s12  ;;  %1032 = vrot.lane.b32.xlu0 %v1016_v37, %s1151_s7  ;;  %s267_s7 = scalar_lea.vmem [#allocation6], %s1651_s8 }
 0x1ac   : > { %s750_s12 = sshll.u32 %s267_s7, 4  ;;  %s1560_s12 = int_to_ptr.vmem [resolvable:$true] %s750_s12 }
 0x1ad   : > { %s1077_s25 = scalar_lea.vmem %s1560_s12, 256  ;;  %p1084_p7 = scmp.lt.s32.totalorder %s1560_s12, %s1082_s14 }
 0x1ae   : > { %p1078_p6 = scmp.ne.s32.totalorder %s1560_s12, %s1077_s25  ;;  %p1085_p10 = scmp.lt.s32.totalorder %s1083_s15, %s1077_s25 }
 0x1af   : > { %622 = vrot.lane.b32.xlu1 %v548_v35, %s1154_s11  ;;  %1042 = vrot.lane.b32.xlu0 %v1016_v37, %s1153_s13 }
 0x1b0   : > { %p1079_p12 = pnand %p1078_p6, %p1652_p11  ;;  %p1086_p2 = por %p1085_p10, %p1084_p7 }
 0x1b2   : > { %p1080_p13 = pneg %p1079_p12 }
 0x1b3   : > { %654 = vperm.xlu1 %1010, %v651_v38   ;;  %624 = vrot.lane.b32.xlu0 %v549_v36, %s1154_s11 }
 0x1b4   : > { %p1087_p4 = pnand %p1086_p2, %p1080_p13 }
 0x215   : > { %v1018_v39 = vpop.permute.xlu1 %1017  ;;  %v1013_v40 = vpop.permute.xlu0 %1012 }
 0x216   : > { %v1020_v41 = vunpack.i.h.bf16 %v1018_v39  ;;  %v1019_v42 = vunpack.i.l.bf16 %v1018_v39  ;;  %v1015_v43 = vunpack.i.h.bf16 %v1013_v40  ;;  %v1014_v44 = vunpack.i.l.bf16 %v1013_v40 }
 0x218   : > { %v554_v45 = vsel %vm278_vm4, %v1014_v44, %v1015_v43  ;;  %v564_v47 = vsel %vm1640_vm13, %v1019_v42, %v1020_v41  ;;  %v555_v48 = vsel %vm278_vm4, %v1015_v43, %v1014_v44  ;;  %v565_v49 = vsel %vm1641_vm14, %v1020_v41, %v1019_v42  ;;  %vm1643_vm13 = vmmov %vm1642_vm5 }
 0x219   : > { %v1028_v50 = vpop.permute.xlu1 %1027  ;;  %v1023_v52 = vpop.permute.xlu0 %1022  ;;  %v894_v53 = vpack.c.bf16 %v564_v47, %v554_v45  ;;  %v897_v54 = vpack.c.bf16 %v565_v49, %v555_v48  ;;  %vm1644_vm4 = vcmp.lt.s32.totalorder %v1344_v16, 15 }
 0x21a   : > { %v1030_v55 = vunpack.i.h.bf16 %v1028_v50  ;;  %v1029_v56 = vunpack.i.l.bf16 %v1028_v50  ;;  %v1025_v58 = vunpack.i.h.bf16 %v1023_v52  ;;  %v1024_v59 = vunpack.i.l.bf16 %v1023_v52  ;;  %vm1645_vm14 = vmmov %vm1644_vm4 }
 0x21b   : > { %896 = vmatprep.subr.msk.bf16.mxu1 %vm1378_vm0, %v894_v53  ;;  %vm1646_vm0 = vcmp.lt.s32.totalorder %v1344_v16, 127 }
 0x21c   : > { %v584_v60 = vsel %vm1642_vm5, %v1029_v56, %v1030_v55  ;;  %v585_v61 = vsel %vm1643_vm13, %v1030_v55, %v1029_v56  ;;  %v574_v62 = vsel %vm1644_vm4, %v1024_v59, %v1025_v58  ;;  %v575_v63 = vsel %vm1645_vm14, %v1025_v58, %v1024_v59  ;;  %899 = vmatpush1.bf16.msk.msra.mxu1 %vm1388_vm1, %v897_v54  ;;  %vm1647_vm5 = vmmov %vm1646_vm0 }
 0x21d   : > { %v900_v0 = vpack.c.bf16 %v584_v60, %v574_v62  ;;  %v903_v3 = vpack.c.bf16 %v585_v61, %v575_v63  ;;  %v1038_v4 = vpop.permute.xlu1 %1037  ;;  %v1033_v46 = vpop.permute.xlu0 %1032  ;;  %vm1648_vm1 = vcmp.lt.s32.totalorder %v1344_v16, 112 }
 0x21e   : > { %v1035_v5 = vunpack.i.h.bf16 %v1033_v46  ;;  %v1034_v7 = vunpack.i.l.bf16 %v1033_v46  ;;  %v1040_v8 = vunpack.i.h.bf16 %v1038_v4  ;;  %v1039_v9 = vunpack.i.l.bf16 %v1038_v4 }
 0x21f   : > { %902 = vmatprep.subr.msk.bf16.mxu1 %vm1395_vm8, %v900_v0  ;;  %vm1649_vm8 = vmmov %vm1648_vm1 }
 0x220   : > { %v596_v10 = vsel %vm1646_vm0, %v1034_v7, %v1035_v5  ;;  %v597_v11 = vsel %vm1647_vm5, %v1035_v5, %v1034_v7  ;;  %905 = vmatpush1.bf16.msk.msra.mxu1 %vm1420_vm11, %v903_v3  ;;  %v606_v57 = vsel %vm389_vm15, %v1039_v9, %v1040_v8  ;;  %v607_v19 = vsel %vm389_vm15, %v1040_v8, %v1039_v9 }
 0x221   : > { %v906_v51 = vpack.c.bf16 %v597_v11, %v549_v36  ;;  %v909_v2 = vpack.c.bf16 %v596_v10, %v548_v35  ;;  %v1043_v12 = vpop.permute.xlu0 %1042  ;;  %v623_v25 = vpop.permute.xlu1 %622 }
 0x222   : > { %v1045_v17 = vunpack.i.h.bf16 %v1043_v12  ;;  %v1044_v18 = vunpack.i.l.bf16 %v1043_v12 }
 0x223   : > { %908 = vmatprep.subr.msk.bf16.mxu1 %vm1429_vm6, %v906_v51 }
 0x224   : > { %v616_v20 = vsel %vm1648_vm1, %v1044_v18, %v1045_v17  ;;  %v617_v6 = vsel %vm1649_vm8, %v1045_v17, %v1044_v18  ;;  %911 = vmatpush1.bf16.msk.msra.mxu1 %vm1445_vm7, %v909_v2 }
 0x225   : > { %v912_v21 = vpack.c.bf16 %v617_v6, %v607_v19  ;;  %v915_v24 = vpack.c.bf16 %v616_v20, %v606_v57  ;;  %v625_v15 = vpop.permute.xlu0 %624 }
 0x226   : > { %v627_v26 = vsel %vm431_vm9, %v625_v15, %v623_v25  ;;  %v626_v13 = vsel %vm431_vm9, %v623_v25, %v625_v15 }
 0x227   : > { %914 = vmatprep.subr.msk.bf16.mxu1 %vm1449_vm2, %v912_v21  ;;  %vm1650_vm2 = vcmask 588800  }
 0x228   : > { %917 = vmatpush1.bf16.msk.msra.mxu1 %vm1461_vm10, %v915_v24 }
 0x229   : > { %868 = vmatprep.subr.msk.mxu1 %vm443_vm12, %v627_v26 }
 0x22c   : > { %869 = vmatpush1.msk.msra.mxu1 %vm442_vm3, %v626_v13 }
 0x22d   : > { %830 = vmatmul.mubr.msk.f32.vlgmr.msra.gmra.mrb[0].mxu1 %vm1650_vm2, %v632_v22 }
 0x232   : > { %v655_v1 = vpop.permute.xlu1 %654 }
 0x300   : > { %v726_v29 = vpop.f32.mrb[0].mxu1 }
 0x301   : > { %v727_v27 = vadd.f32 %v726_v29, %v655_v1  ;;  %v728_v14 = vpop.f32.mrb[1].mxu1 }
 0x302   : > { %v729_v23 = vadd.f32 %v728_v14, %v655_v1 }
 0x303   : > { %v731_v30 = vmax.f32 %v727_v27, 0.0 }
 0x304   : > { %v732_v31 = vmax.f32 %v729_v23, 0.0 }
 0x305   : > { %733 = vst [vmem:[%s267_s7] sm:$0xff] %v731_v30 }
 0x306   : > { %734 = vst [vmem:[%s267_s7 + $0x8] sm:$0xff] %v732_v31 }
 0x307   : > { %1090 = shalt.err (!%p1087_p4)
}
 0x308   : > { %s1091_s26 = scalar_lea.hbm %s1558_s29, 256  ;;  %s1095_s18 = scalar_lea.hbm %s1608_s6, 512 }
 0x309   : > { %p1092_p5 = scmp.ne.s32.totalorder %s1558_s29, %s1091_s26  ;;  %p1096_p0 = scmp.lt.u32.totalorder %s1558_s29, %s1608_s6 }
 0x30a   : > { %p1097_p1 = scmp.lt.u32.totalorder %s1095_s18, %s1091_s26  ;;  %p1099_p6 = scmp.lt.u32.totalorder %s1091_s26, %s1558_s29 }
 0x30b   : > { %p1093_p8 = pnand %p1092_p5, %p1652_p11 }
 0x30c   : > { %p1098_p3 = por %p1097_p1, %p1096_p0 }
 0x30d   : > { %p1094_p9 = pneg %p1093_p8 }
 0x30e   : > { %p1100_p12 = por %p1099_p6, %p1098_p3 }
 0x310   : > { %p1101_p13 = pnand %p1100_p12, %p1094_p9 }
 0x312   : > { %1104 = shalt.err (!%p1101_p13)
}
 0x313   : > { %920 = dma.vmem_to_hbm [thread:$0]  (%p1652_p11), %s1560_s12, 256, %s1558_s29, %s736_s19  }
 0x314 PF: > { %s762_s7 = sand.u32 1, %s1131_s21   ;;  %p1653_p7 = scmp.ne.s32.totalorder %s1620_s10, 0 }
 0x315   : > { %p1654_p10 = scmp.ge.s32.totalorder %s1143_s24, 2  ;;  %s763_s13 = scalar_lea.sflag [#allocation5], %s762_s7 }
 0x317   : > { %p927_p2 = pnand %p1654_p10, %p1653_p7 }
 0x319   : > { %1126 = dma.done.wait (!%p927_p2), %s763_s13, 256  }
 0x31a   : > { %1128 = vsyncadd (!%p927_p2), %s763_s13, 4294967040  ;;  %p19_p4 = scmp.ge.s32.totalorder %s1218_s27, 4   ;;  %s1655_s21 = smov %s1135_s22 }
 0x31b   : > { %s1656_s22 = smov %s1139_s23  ;;  %s1657_s23 = smov %s1230_s30 }
 0x31c   : > { %s1658_s24 = smov %s1218_s27  ;;  %21 = sbr.rel (!%p19_p4) target bundleno = 5 (0x5), region = 89 }
 0x323   :  { %768 = vsyncpa [#allocation4], 1 }
 0x324   :  { %770 = vsyncpa [#allocation4 + $0x1], 1 }
 0x325   :  { %771 = vsyncpa [#allocation5], 1 }
 0x326   :  { %773 = vsyncpa [#allocation5 + $0x1], 1 }

</bundles_post_ra>
